<compile_context>
chip_gen: v7x
topology: tpu7x:2x2x1
jax: 0.10.0
libtpu: 0.0.40
codegen_flags: <defaults>
</compile_context>

<pallas_src>
import functools

import jax
import jax.numpy as jnp
from jax.experimental import pallas as pl
from jax.experimental.pallas import tpu as pltpu

# Hidden layer widths of the autoencoder (excluding the data-dependent `dim`).
_HIDDEN = (128, 64, 32, 16, 32, 64, 128)
_LANE = 128
_SUBLANE = 8
_MAX_BATCH_TILE = 1024   # per-step x+out traffic dominates fixed overhead here
_MIN_GRID_STEPS = 2      # let ("parallel",) shard across v7x's 2 TensorCores


def _layer_dims(dim):
    """[(in, out), ...] for the 8 linear layers."""
    widths = (dim,) + _HIDDEN + (dim,)
    return list(zip(widths[:-1], widths[1:]))


def _round_up(x, m):
    return ((x + m - 1) // m) * m


def _cdiv(a, b):
    return (a + b - 1) // b


def _vmem_budget_bytes():
    """75% of per-core VMEM (leaves compiler-scratch headroom, esp. on v7x)."""
    cap = 64 << 20  # conservative fallback = v7x per-TC VMEM
    try:
        info = pltpu.get_tpu_info()
        cap = int(getattr(info, "vmem_capacity_bytes", cap))
    except Exception:
        pass
    return int(min((cap * 3) // 4, 100 << 20))


def ae_kernel(x_ref, *refs, out_widths, compute_dtype):
    """Fused 8x (Linear + ReLU) on one (TB, dim) batch tile.

    refs = w1, ..., w8, bias_pack, out_ref (all VMEM refs).
      wi:        (in_i, out_i), already in `compute_dtype`.
      bias_pack: (8, max(128, dim)) float32; row i = layer-i bias (zero-padded).
    Matmuls run in `compute_dtype` with f32 accumulation; bias-add and ReLU
    stay in f32 on the VPU.
    """
    out_ref = refs[-1]
    bias_ref = refs[-2]
    w_refs = refs[:-2]

    h = x_ref[...]  # (TB, dim)
    for i, w_ref in enumerate(w_refs):
        fo = out_widths[i]
        h = jnp.dot(
            h.astype(compute_dtype),
            w_ref[...],  # pre-cast in the wrapper; no per-step re-cast
            preferred_element_type=jnp.float32,
        )
        b = bias_ref[i, :fo]                      # (fo,) f32
        h = jnp.maximum(h + b, 0.0)               # ReLU after every layer
    out_ref[...] = h.astype(out_ref.dtype)


@functools.partial(
    jax.jit, static_argnames=("compute_dtype", "out_dtype", "block_batch")
)
def ae_forward(
    x,
    params,
    *,
    compute_dtype=jnp.float32,
    out_dtype=None,
    block_batch=_MAX_BATCH_TILE,
):
    """params: flat list [w1, b1, ..., w8, b8] with wi shaped (in, out)."""
    b, dim = x.shape
    out_dtype = jnp.float32 if out_dtype is None else out_dtype

    n_layers = len(params) // 2
    weights = [params[2 * i].astype(compute_dtype) for i in range(n_layers)]
    biases = [jnp.ravel(params[2 * i + 1]).astype(jnp.float32) for i in range(n_layers)]
    out_widths = tuple(int(w.shape[1]) for w in weights)

    # Pack the 8 bias vectors into one (8, max(128, dim)) operand.
    bias_width = max(_LANE, max(out_widths))
    bpack = jnp.zeros((n_layers, bias_width), jnp.float32)
    for i, bvec in enumerate(biases):
        bpack = bpack.at[i, : bvec.shape[0]].set(bvec)

    # --- batch tiling (no feature-dim padding; last dim stays the true dim) --
    b_pad = _round_up(b, _SUBLANE)
    tb = min(block_batch, _round_up(_cdiv(b_pad, _MIN_GRID_STEPS), _SUBLANE))
    tb = max(tb, _SUBLANE)
    grid = (_cdiv(b_pad, tb),)  # final tile may be ragged; OOB out rows dropped

    x_p = x
    if b_pad != b:  # only pad the batch axis, and only when b % 8 != 0
        x_p = jnp.zeros((b_pad, dim), x.dtype).at[:b, :].set(x)

    # --- specs ---------------------------------------------------------------
    x_spec = pl.BlockSpec((tb, dim), lambda i: (i, 0))
    w_specs = [pl.BlockSpec(w.shape, lambda i: (0, 0)) for w in weights]
    b_spec = pl.BlockSpec(bpack.shape, lambda i: (0, 0))
    out_spec = pl.BlockSpec((tb, dim), lambda i: (i, 0))

    # --- cost estimate & VMEM budget ------------------------------------------
    x_item = jnp.dtype(x_p.dtype).itemsize
    o_item = jnp.dtype(out_dtype).itemsize
    param_bytes = int(
        sum(w.size * jnp.dtype(w.dtype).itemsize for w in weights)
        + bpack.size * 4
    )
    flops = 2 * b_pad * sum(fi * fo for fi, fo in _layer_dims(dim))
    bytes_accessed = b_pad * dim * (x_item + o_item) + param_bytes
    cost = pl.CostEstimate(
        flops=int(flops), transcendentals=0, bytes_accessed=int(bytes_accessed)
    )

    needed = 2 * tb * dim * (x_item + o_item) + 2 * param_bytes + (8 << 20)
    vmem_bytes = int(min(max(needed, 32 << 20), _vmem_budget_bytes()))

    kernel = functools.partial(
        ae_kernel, out_widths=out_widths, compute_dtype=compute_dtype
    )
    out = pl.pallas_call(
        kernel,
        out_shape=jax.ShapeDtypeStruct((b_pad, dim), out_dtype),
        grid=grid,
        in_specs=[x_spec] + w_specs + [b_spec],
        out_specs=out_spec,
        compiler_params=pltpu.CompilerParams(
            dimension_semantics=("parallel",),
            vmem_limit_bytes=vmem_bytes,
        ),
        cost_estimate=cost,
    )(x_p, *weights, bpack)

    if b_pad != b:
        out = out[:b]
    return out


def init_ae_params(dim, key):
    """PyTorch nn.Linear-style init (uniform +/- 1/sqrt(fan_in)); W stored (in, out)."""
    params = []
    for fan_in, fan_out in _layer_dims(dim):
        key, kw, kb = jax.random.split(key, 3)
        bound = 1.0 / jnp.sqrt(jnp.float32(fan_in))
        w = jax.random.uniform(kw, (fan_in, fan_out), jnp.float32, -bound, bound)
        bvec = jax.random.uniform(kb, (1, fan_out), jnp.float32, -bound, bound)
        params.extend([w, bvec])
    return params


def ae_reference(x, params, compute_dtype=jnp.float32):
    """Pure-JAX reference for correctness checking."""
    h = x.astype(jnp.float32)
    for i in range(len(params) // 2):
        w, b = params[2 * i], params[2 * i + 1]
        h = jnp.dot(
            h.astype(compute_dtype),
            w.astype(compute_dtype),
            preferred_element_type=jnp.float32,
        )
        h = jnp.maximum(h + b.astype(jnp.float32), 0.0)
    return h


# TODO(synk): `AE.feed` (Adam/MSE training loop) is not part of forward(); not implemented.


if __name__ == "__main__":
    key = jax.random.PRNGKey(0)
    k_x, k_p, k_x2, k_x3 = jax.random.split(key, 4)

    batch, dim = 8, 32  # small synthetic problem; dim is the AE's `dim` arg
    x = jax.random.normal(k_x, (batch, dim), dtype=jnp.float32)
    params = init_ae_params(dim, k_p)

    # f32 path: exact semantics of the PyTorch module.
    out = jax.block_until_ready(ae_forward(x, params))
    ref = ae_reference(x, params)
    assert out.shape == (batch, dim)
    assert jnp.allclose(out, ref, atol=1e-4, rtol=1e-4), "f32 mismatch vs reference"

    # Multi-tile grid with ragged final tile (B=40, TB=16 -> grid=(3,)).
    batch2 = 40
    x2 = jax.random.normal(k_x2, (batch2, dim), dtype=jnp.float32)
    out2 = jax.block_until_ready(ae_forward(x2, params, block_batch=16))
    ref2 = ae_reference(x2, params)
    assert out2.shape == (batch2, dim)
    assert jnp.allclose(out2, ref2, atol=1e-4, rtol=1e-4), "ragged-tile mismatch"

    # Non-multiple-of-8 batch (exercises the minimal batch-only pad path).
    batch3 = 13
    x3 = jax.random.normal(k_x3, (batch3, dim), dtype=jnp.float32)
    out3 = jax.block_until_ready(ae_forward(x3, params))
    ref3 = ae_reference(x3, params)
    assert out3.shape == (batch3, dim)
    assert jnp.allclose(out3, ref3, atol=1e-4, rtol=1e-4), "pad-batch mismatch"

    # bf16-MXU path (v6e/v7x native): bf16 operands, f32 accumulate/bias/ReLU.
    out_bf16 = jax.block_until_ready(ae_forward(x, params, compute_dtype=jnp.bfloat16))
    ref_bf16 = ae_reference(x, params, compute_dtype=jnp.bfloat16)
    assert jnp.allclose(out_bf16, ref_bf16, atol=2e-2, rtol=2e-2), "bf16 mismatch"

    print("KERNEL_OK")
</pallas_src>

<mosaic_0001>
module attributes {stable_mosaic.version = 11 : i64} {
  func.func @ae_kernel(%arg0: i32, %arg1: memref<8x32xf32, #tpu.memory_space<vmem>>, %arg2: memref<32x128xf32, #tpu.memory_space<vmem>>, %arg3: memref<128x64xf32, #tpu.memory_space<vmem>>, %arg4: memref<64x32xf32, #tpu.memory_space<vmem>>, %arg5: memref<32x16xf32, #tpu.memory_space<vmem>>, %arg6: memref<16x32xf32, #tpu.memory_space<vmem>>, %arg7: memref<32x64xf32, #tpu.memory_space<vmem>>, %arg8: memref<64x128xf32, #tpu.memory_space<vmem>>, %arg9: memref<128x32xf32, #tpu.memory_space<vmem>>, %arg10: memref<8x128xf32, #tpu.memory_space<vmem>>, %arg11: memref<8x32xf32, #tpu.memory_space<vmem>>) attributes {dimension_semantics = [#tpu.dimension_semantics<parallel>], iteration_bounds = array<i64: 1>, scalar_prefetch = 0 : i64, scratch_operands = 0 : i64, tpu.core_type = #tpu.core_type<tc>, window_params = [{transform_indices = @transform_0, window_bounds = array<i64: 8, 32>}, {pipeline_mode = #tpu.pipeline_mode<synchronous>, transform_indices = @transform_1, window_bounds = array<i64: 32, 128>}, {pipeline_mode = #tpu.pipeline_mode<synchronous>, transform_indices = @transform_2, window_bounds = array<i64: 128, 64>}, {pipeline_mode = #tpu.pipeline_mode<synchronous>, transform_indices = @transform_3, window_bounds = array<i64: 64, 32>}, {pipeline_mode = #tpu.pipeline_mode<synchronous>, transform_indices = @transform_4, window_bounds = array<i64: 32, 16>}, {pipeline_mode = #tpu.pipeline_mode<synchronous>, transform_indices = @transform_5, window_bounds = array<i64: 16, 32>}, {pipeline_mode = #tpu.pipeline_mode<synchronous>, transform_indices = @transform_6, window_bounds = array<i64: 32, 64>}, {pipeline_mode = #tpu.pipeline_mode<synchronous>, transform_indices = @transform_7, window_bounds = array<i64: 64, 128>}, {pipeline_mode = #tpu.pipeline_mode<synchronous>, transform_indices = @transform_8, window_bounds = array<i64: 128, 32>}, {pipeline_mode = #tpu.pipeline_mode<synchronous>, transform_indices = @transform_9, window_bounds = array<i64: 8, 128>}, {transform_indices = @transform_10, window_bounds = array<i64: 8, 32>}]} {
    %c0 = arith.constant 0 : index
    %c0_0 = arith.constant 0 : index
    %0 = vector.load %arg1[%c0, %c0_0] : memref<8x32xf32, #tpu.memory_space<vmem>>, vector<8x32xf32>
    %c0_1 = arith.constant 0 : index
    %c0_2 = arith.constant 0 : index
    %1 = vector.load %arg2[%c0_1, %c0_2] : memref<32x128xf32, #tpu.memory_space<vmem>>, vector<32x128xf32>
    %cst = arith.constant dense<0.000000e+00> : vector<8x128xf32>
    %2 = tpu.matmul %0, %1, %cst {dimension_numbers = #tpu.dot_dimension_numbers<[1], [0], [0], [1], [0, 0, 1, 1], [], []>} : vector<8x32xf32>, vector<32x128xf32>, vector<8x128xf32> -> vector<8x128xf32>
    %c0_3 = arith.constant 0 : index
    %c0_4 = arith.constant 0 : index
    %3 = vector.load %arg10[%c0_3, %c0_4] : memref<8x128xf32, #tpu.memory_space<vmem>>, vector<1x128xf32>
    %4 = vector.shape_cast %3 : vector<1x128xf32> to vector<128xf32>
    %5 = vector.shape_cast %4 : vector<128xf32> to vector<1x128xf32>
    %6 = vector.broadcast %5 : vector<1x128xf32> to vector<8x128xf32>
    %7 = arith.addf %2, %6 : vector<8x128xf32>
    %cst_5 = arith.constant 0.000000e+00 : f32
    %8 = vector.broadcast %cst_5 : f32 to vector<8x128xf32>
    %9 = arith.maximumf %7, %8 : vector<8x128xf32>
    %c0_6 = arith.constant 0 : index
    %c0_7 = arith.constant 0 : index
    %10 = vector.load %arg3[%c0_6, %c0_7] : memref<128x64xf32, #tpu.memory_space<vmem>>, vector<128x64xf32>
    %cst_8 = arith.constant dense<0.000000e+00> : vector<8x64xf32>
    %11 = tpu.matmul %9, %10, %cst_8 {dimension_numbers = #tpu.dot_dimension_numbers<[1], [0], [0], [1], [0, 0, 1, 1], [], []>} : vector<8x128xf32>, vector<128x64xf32>, vector<8x64xf32> -> vector<8x64xf32>
    %c1 = arith.constant 1 : index
    %c0_9 = arith.constant 0 : index
    %12 = vector.load %arg10[%c1, %c0_9] : memref<8x128xf32, #tpu.memory_space<vmem>>, vector<1x64xf32>
    %13 = vector.shape_cast %12 : vector<1x64xf32> to vector<64xf32>
    %14 = vector.shape_cast %13 : vector<64xf32> to vector<1x64xf32>
    %15 = vector.broadcast %14 : vector<1x64xf32> to vector<8x64xf32>
    %16 = arith.addf %11, %15 : vector<8x64xf32>
    %cst_10 = arith.constant 0.000000e+00 : f32
    %17 = vector.broadcast %cst_10 : f32 to vector<8x64xf32>
    %18 = arith.maximumf %16, %17 : vector<8x64xf32>
    %c0_11 = arith.constant 0 : index
    %c0_12 = arith.constant 0 : index
    %19 = vector.load %arg4[%c0_11, %c0_12] : memref<64x32xf32, #tpu.memory_space<vmem>>, vector<64x32xf32>
    %cst_13 = arith.constant dense<0.000000e+00> : vector<8x32xf32>
    %20 = tpu.matmul %18, %19, %cst_13 {dimension_numbers = #tpu.dot_dimension_numbers<[1], [0], [0], [1], [0, 0, 1, 1], [], []>} : vector<8x64xf32>, vector<64x32xf32>, vector<8x32xf32> -> vector<8x32xf32>
    %c2 = arith.constant 2 : index
    %c0_14 = arith.constant 0 : index
    %21 = vector.load %arg10[%c2, %c0_14] : memref<8x128xf32, #tpu.memory_space<vmem>>, vector<1x32xf32>
    %22 = vector.shape_cast %21 : vector<1x32xf32> to vector<32xf32>
    %23 = vector.shape_cast %22 : vector<32xf32> to vector<1x32xf32>
    %24 = vector.broadcast %23 : vector<1x32xf32> to vector<8x32xf32>
    %25 = arith.addf %20, %24 : vector<8x32xf32>
    %cst_15 = arith.constant 0.000000e+00 : f32
    %26 = vector.broadcast %cst_15 : f32 to vector<8x32xf32>
    %27 = arith.maximumf %25, %26 : vector<8x32xf32>
    %c0_16 = arith.constant 0 : index
    %c0_17 = arith.constant 0 : index
    %28 = vector.load %arg5[%c0_16, %c0_17] : memref<32x16xf32, #tpu.memory_space<vmem>>, vector<32x16xf32>
    %cst_18 = arith.constant dense<0.000000e+00> : vector<8x16xf32>
    %29 = tpu.matmul %27, %28, %cst_18 {dimension_numbers = #tpu.dot_dimension_numbers<[1], [0], [0], [1], [0, 0, 1, 1], [], []>} : vector<8x32xf32>, vector<32x16xf32>, vector<8x16xf32> -> vector<8x16xf32>
    %c3 = arith.constant 3 : index
    %c0_19 = arith.constant 0 : index
    %30 = vector.load %arg10[%c3, %c0_19] : memref<8x128xf32, #tpu.memory_space<vmem>>, vector<1x16xf32>
    %31 = vector.shape_cast %30 : vector<1x16xf32> to vector<16xf32>
    %32 = vector.shape_cast %31 : vector<16xf32> to vector<1x16xf32>
    %33 = vector.broadcast %32 : vector<1x16xf32> to vector<8x16xf32>
    %34 = arith.addf %29, %33 : vector<8x16xf32>
    %cst_20 = arith.constant 0.000000e+00 : f32
    %35 = vector.broadcast %cst_20 : f32 to vector<8x16xf32>
    %36 = arith.maximumf %34, %35 : vector<8x16xf32>
    %c0_21 = arith.constant 0 : index
    %c0_22 = arith.constant 0 : index
    %37 = vector.load %arg6[%c0_21, %c0_22] : memref<16x32xf32, #tpu.memory_space<vmem>>, vector<16x32xf32>
    %cst_23 = arith.constant dense<0.000000e+00> : vector<8x32xf32>
    %38 = tpu.matmul %36, %37, %cst_23 {dimension_numbers = #tpu.dot_dimension_numbers<[1], [0], [0], [1], [0, 0, 1, 1], [], []>} : vector<8x16xf32>, vector<16x32xf32>, vector<8x32xf32> -> vector<8x32xf32>
    %c4 = arith.constant 4 : index
    %c0_24 = arith.constant 0 : index
    %39 = vector.load %arg10[%c4, %c0_24] : memref<8x128xf32, #tpu.memory_space<vmem>>, vector<1x32xf32>
    %40 = vector.shape_cast %39 : vector<1x32xf32> to vector<32xf32>
    %41 = vector.shape_cast %40 : vector<32xf32> to vector<1x32xf32>
    %42 = vector.broadcast %41 : vector<1x32xf32> to vector<8x32xf32>
    %43 = arith.addf %38, %42 : vector<8x32xf32>
    %cst_25 = arith.constant 0.000000e+00 : f32
    %44 = vector.broadcast %cst_25 : f32 to vector<8x32xf32>
    %45 = arith.maximumf %43, %44 : vector<8x32xf32>
    %c0_26 = arith.constant 0 : index
    %c0_27 = arith.constant 0 : index
    %46 = vector.load %arg7[%c0_26, %c0_27] : memref<32x64xf32, #tpu.memory_space<vmem>>, vector<32x64xf32>
    %cst_28 = arith.constant dense<0.000000e+00> : vector<8x64xf32>
    %47 = tpu.matmul %45, %46, %cst_28 {dimension_numbers = #tpu.dot_dimension_numbers<[1], [0], [0], [1], [0, 0, 1, 1], [], []>} : vector<8x32xf32>, vector<32x64xf32>, vector<8x64xf32> -> vector<8x64xf32>
    %c5 = arith.constant 5 : index
    %c0_29 = arith.constant 0 : index
    %48 = vector.load %arg10[%c5, %c0_29] : memref<8x128xf32, #tpu.memory_space<vmem>>, vector<1x64xf32>
    %49 = vector.shape_cast %48 : vector<1x64xf32> to vector<64xf32>
    %50 = vector.shape_cast %49 : vector<64xf32> to vector<1x64xf32>
    %51 = vector.broadcast %50 : vector<1x64xf32> to vector<8x64xf32>
    %52 = arith.addf %47, %51 : vector<8x64xf32>
    %cst_30 = arith.constant 0.000000e+00 : f32
    %53 = vector.broadcast %cst_30 : f32 to vector<8x64xf32>
    %54 = arith.maximumf %52, %53 : vector<8x64xf32>
    %c0_31 = arith.constant 0 : index
    %c0_32 = arith.constant 0 : index
    %55 = vector.load %arg8[%c0_31, %c0_32] : memref<64x128xf32, #tpu.memory_space<vmem>>, vector<64x128xf32>
    %cst_33 = arith.constant dense<0.000000e+00> : vector<8x128xf32>
    %56 = tpu.matmul %54, %55, %cst_33 {dimension_numbers = #tpu.dot_dimension_numbers<[1], [0], [0], [1], [0, 0, 1, 1], [], []>} : vector<8x64xf32>, vector<64x128xf32>, vector<8x128xf32> -> vector<8x128xf32>
    %c6 = arith.constant 6 : index
    %c0_34 = arith.constant 0 : index
    %57 = vector.load %arg10[%c6, %c0_34] : memref<8x128xf32, #tpu.memory_space<vmem>>, vector<1x128xf32>
    %58 = vector.shape_cast %57 : vector<1x128xf32> to vector<128xf32>
    %59 = vector.shape_cast %58 : vector<128xf32> to vector<1x128xf32>
    %60 = vector.broadcast %59 : vector<1x128xf32> to vector<8x128xf32>
    %61 = arith.addf %56, %60 : vector<8x128xf32>
    %cst_35 = arith.constant 0.000000e+00 : f32
    %62 = vector.broadcast %cst_35 : f32 to vector<8x128xf32>
    %63 = arith.maximumf %61, %62 : vector<8x128xf32>
    %c0_36 = arith.constant 0 : index
    %c0_37 = arith.constant 0 : index
    %64 = vector.load %arg9[%c0_36, %c0_37] : memref<128x32xf32, #tpu.memory_space<vmem>>, vector<128x32xf32>
    %cst_38 = arith.constant dense<0.000000e+00> : vector<8x32xf32>
    %65 = tpu.matmul %63, %64, %cst_38 {dimension_numbers = #tpu.dot_dimension_numbers<[1], [0], [0], [1], [0, 0, 1, 1], [], []>} : vector<8x128xf32>, vector<128x32xf32>, vector<8x32xf32> -> vector<8x32xf32>
    %c7 = arith.constant 7 : index
    %c0_39 = arith.constant 0 : index
    %66 = vector.load %arg10[%c7, %c0_39] : memref<8x128xf32, #tpu.memory_space<vmem>>, vector<1x32xf32>
    %67 = vector.shape_cast %66 : vector<1x32xf32> to vector<32xf32>
    %68 = vector.shape_cast %67 : vector<32xf32> to vector<1x32xf32>
    %69 = vector.broadcast %68 : vector<1x32xf32> to vector<8x32xf32>
    %70 = arith.addf %65, %69 : vector<8x32xf32>
    %cst_40 = arith.constant 0.000000e+00 : f32
    %71 = vector.broadcast %cst_40 : f32 to vector<8x32xf32>
    %72 = arith.maximumf %70, %71 : vector<8x32xf32>
    %c0_41 = arith.constant 0 : index
    %c0_42 = arith.constant 0 : index
    %73 = vector.load %arg11[%c0_41, %c0_42] : memref<8x32xf32, #tpu.memory_space<vmem>>, vector<8x32xf32>
    tpu.vector_store %arg11[%c0_41, %c0_42], %72 {strides = array<i32>} : memref<8x32xf32, #tpu.memory_space<vmem>>, vector<8x32xf32>,
    return
  }
  func.func @transform_0(%arg0: i32) -> (i32, i32) {
    %c0_i32 = arith.constant 0 : i32
    %c0_i32_0 = arith.constant 0 : i32
    return %arg0, %c0_i32 : i32, i32
  }
  func.func @transform_1(%arg0: i32) -> (i32, i32) {
    %c0_i32 = arith.constant 0 : i32
    %c0_i32_0 = arith.constant 0 : i32
    %c0_i32_1 = arith.constant 0 : i32
    return %c0_i32, %c0_i32_0 : i32, i32
  }
  func.func @transform_2(%arg0: i32) -> (i32, i32) {
    %c0_i32 = arith.constant 0 : i32
    %c0_i32_0 = arith.constant 0 : i32
    %c0_i32_1 = arith.constant 0 : i32
    return %c0_i32, %c0_i32_0 : i32, i32
  }
  func.func @transform_3(%arg0: i32) -> (i32, i32) {
    %c0_i32 = arith.constant 0 : i32
    %c0_i32_0 = arith.constant 0 : i32
    %c0_i32_1 = arith.constant 0 : i32
    return %c0_i32, %c0_i32_0 : i32, i32
  }
  func.func @transform_4(%arg0: i32) -> (i32, i32) {
    %c0_i32 = arith.constant 0 : i32
    %c0_i32_0 = arith.constant 0 : i32
    %c0_i32_1 = arith.constant 0 : i32
    return %c0_i32, %c0_i32_0 : i32, i32
  }
  func.func @transform_5(%arg0: i32) -> (i32, i32) {
    %c0_i32 = arith.constant 0 : i32
    %c0_i32_0 = arith.constant 0 : i32
    %c0_i32_1 = arith.constant 0 : i32
    return %c0_i32, %c0_i32_0 : i32, i32
  }
  func.func @transform_6(%arg0: i32) -> (i32, i32) {
    %c0_i32 = arith.constant 0 : i32
    %c0_i32_0 = arith.constant 0 : i32
    %c0_i32_1 = arith.constant 0 : i32
    return %c0_i32, %c0_i32_0 : i32, i32
  }
  func.func @transform_7(%arg0: i32) -> (i32, i32) {
    %c0_i32 = arith.constant 0 : i32
    %c0_i32_0 = arith.constant 0 : i32
    %c0_i32_1 = arith.constant 0 : i32
    return %c0_i32, %c0_i32_0 : i32, i32
  }
  func.func @transform_8(%arg0: i32) -> (i32, i32) {
    %c0_i32 = arith.constant 0 : i32
    %c0_i32_0 = arith.constant 0 : i32
    %c0_i32_1 = arith.constant 0 : i32
    return %c0_i32, %c0_i32_0 : i32, i32
  }
  func.func @transform_9(%arg0: i32) -> (i32, i32) {
    %c0_i32 = arith.constant 0 : i32
    %c0_i32_0 = arith.constant 0 : i32
    %c0_i32_1 = arith.constant 0 : i32
    return %c0_i32, %c0_i32_0 : i32, i32
  }
  func.func @transform_10(%arg0: i32) -> (i32, i32) {
    %c0_i32 = arith.constant 0 : i32
    %c0_i32_0 = arith.constant 0 : i32
    return %arg0, %c0_i32 : i32, i32
  }
}

</mosaic_0001>

<bundles_post_ra>
// kernel: ae_forward.1
= control target key start
LH: loop header
LB: loop body
LE: loop exit
PB: predicated region body
PF: predicated region fallthrough
CT: control target
= control target key end

     0   :  { %v1096_v3 = vmov 0.0|0.0   ;;  %vm1097_vm0 = vmmov 0   ;;  %v1098_v6 = vmov 0.0   ;;  %s1433_s0 = inlined_call_operand.vmem [shape: f32[8,32], index: 0, kind: input, shape index: {}]   ;;  %s1434_s1 = inlined_call_operand.vmem [shape: f32[32,128], index: 1, kind: input, shape index: {}]   ;;  %s1435_s2 = inlined_call_operand.vmem [shape: f32[128,64], index: 2, kind: input, shape index: {}]   ;;  %s1436_s3 = inlined_call_operand.vmem [shape: f32[64,32], index: 3, kind: input, shape index: {}]   ;;  %s1437_s4 = inlined_call_operand.vmem [shape: f32[32,16], index: 4, kind: input, shape index: {}]   ;;  %s1438_s5 = inlined_call_operand.vmem [shape: f32[16,32], index: 5, kind: input, shape index: {}]   ;;  %s1439_s6 = inlined_call_operand.vmem [shape: f32[32,64], index: 6, kind: input, shape index: {}]   ;;  %s1440_s7 = inlined_call_operand.vmem [shape: f32[64,128], index: 7, kind: input, shape index: {}]   ;;  %s1441_s8 = inlined_call_operand.vmem [shape: f32[128,32], index: 8, kind: input, shape index: {}]   ;;  %s1442_s9 = inlined_call_operand.vmem [shape: f32[8,128], index: 9, kind: input, shape index: {}]   ;;  %s1443_s10 = inlined_call_operand.hbm [shape: f32[8,32], index: 10, kind: output, shape index: {}]  }
   0x1   :  { %v37_v0 = vld [vmem:[%s1434_s1] sm:$0xff]  ;;  %v38_v1 = vld [vmem:[%s1434_s1 + $0x8] sm:$0xff]  ;;  %v39_v2 = vld [vmem:[%s1434_s1 + $0x10] sm:$0xff]  ;;  %975 = vmatprep.subr.bf16.mxu0 %v1096_v3  ;;  %835 = vmatprep.mubr.msk.f32.mxu0 %vm1097_vm0, %v1098_v6 }
   0x2   :  { %v976_v4 = vpack.c.bf16 %v38_v1, %v37_v0  ;;  %v40_v5 = vld [vmem:[%s1434_s1 + $0x18] sm:$0xff]  ;;  %v121_v7 = vld [vmem:[%s1435_s2] sm:$0xff]  ;;  %981 = vmatprep.subr.bf16.mxu1 %v1096_v3  ;;  %v122_v8 = vld [vmem:[%s1435_s2 + $0x8] sm:$0xff]  ;;  %870 = vmatprep.mubr.msk.f32.mxu1 %vm1097_vm0, %v1098_v6 }
   0x3   :  { %v123_v9 = vld [vmem:[%s1435_s2 + $0x10] sm:$0xff]  ;;  %v124_v10 = vld [vmem:[%s1435_s2 + $0x18] sm:$0xff]  ;;  %v979_v11 = vpack.c.bf16 %v40_v5, %v39_v2  ;;  %v982_v12 = vpack.c.bf16 %v122_v8, %v121_v7  ;;  %v125_v14 = vld [vmem:[%s1435_s2 + $0x20] sm:$0xff] }
   0x4   :  { %977 = vmatpush3.bf16.msra.mxu0 %v976_v4  ;;  %v985_v13 = vpack.c.bf16 %v124_v10, %v123_v9  ;;  %v126_v15 = vld [vmem:[%s1435_s2 + $0x28] sm:$0xff] }
   0x5   :  { %978 = vmatprep.subr.bf16.mxu0 %v1096_v3  ;;  %983 = vmatpush3.bf16.msra.mxu1 %v982_v12 }
   0x6   :  { %984 = vmatprep.subr.bf16.mxu1 %v1096_v3 }
   0x7   :  { %15 = vsyncpa [#allocation3], 0  ;;  %v36_v16 = vld [vmem:[%s1433_s0] sm:$0xff]  ;;  %vm46_vm1 = vcmask 261120   ;;  %v988_v17 = vpack.c.bf16 %v126_v15, %v125_v14  ;;  %v127_v18 = vld [vmem:[%s1435_s2 + $0x30] sm:$0xff]  ;;  %vm226_vm2 = vcmask 523264  }
   0x8   :  { %980 = vmatpush3.bf16.msra.mxu0 %v979_v11  ;;  %v128_v19 = vld [vmem:[%s1435_s2 + $0x38] sm:$0xff]  ;;  %v129_v21 = vld [vmem:[%s1435_s2 + $0x40] sm:$0xff]  ;;  %v130_v22 = vld [vmem:[%s1435_s2 + $0x48] sm:$0xff]  ;;  %vm391_vm3 = vcmask 130048   ;;  %s1099_s27 = smov [#allocation2]  }
   0x9   :  { %1005 = vmatprep.subr.bf16.mxu0 %v1096_v3  ;;  %986 = vmatpush3.bf16.msra.mxu1 %v985_v13  ;;  %v991_v20 = vpack.c.bf16 %v128_v19, %v127_v18  ;;  %v994_v23 = vpack.c.bf16 %v130_v22, %v129_v21  ;;  %v131_v24 = vld [vmem:[%s1435_s2 + $0x50] sm:$0xff]  ;;  %v132_v25 = vld [vmem:[%s1435_s2 + $0x58] sm:$0xff]  ;;  %v133_v27 = vld [vmem:[%s1435_s2 + $0x60] sm:$0xff]  ;;  %s735_s28 = sshll.u32 %s1099_s27, 4  ;;  %s736_s28 = int_to_ptr.vmem [resolvable:$true] %s735_s28 }
   0xa   :  { %987 = vmatprep.subr.bf16.mxu1 %v1096_v3  ;;  %v997_v26 = vpack.c.bf16 %v132_v25, %v131_v24  ;;  %v134_v28 = vld [vmem:[%s1435_s2 + $0x68] sm:$0xff]  ;;  %v135_v30 = vld [vmem:[%s1435_s2 + $0x70] sm:$0xff]  ;;  %v136_v31 = vld [vmem:[%s1435_s2 + $0x78] sm:$0xff]  ;;  %p1077_p1 = scmp.lt.s32.totalorder %s736_s28, %s736_s28 }
   0xb   :  { %836 = vmatmul.mubr.msk.f32.vlgmr.msra.gmra.mrb[0].mxu0 %vm46_vm1, %v36_v16  ;;  %v1000_v29 = vpack.c.bf16 %v134_v28, %v133_v27  ;;  %v1003_v32 = vpack.c.bf16 %v136_v31, %v135_v30  ;;  %v213_v33 = vld [vmem:[%s1436_s3] sm:$0xff]  ;;  %v214_v34 = vld [vmem:[%s1436_s3 + $0x8] sm:$0xff]  ;;  %v215_v35 = vld [vmem:[%s1436_s3 + $0x10] sm:$0xff] }
   0xc   :  { %889 = vmatprep.mubr.msk.f32.mxu0 %vm1097_vm0, %v1098_v6  ;;  %v1006_v36 = vpack.c.bf16 %v214_v34, %v213_v33  ;;  %v216_v37 = vld [vmem:[%s1436_s3 + $0x18] sm:$0xff]  ;;  %v217_v39 = vld [vmem:[%s1436_s3 + $0x20] sm:$0xff]  ;;  %v218_v40 = vld [vmem:[%s1436_s3 + $0x28] sm:$0xff] }
   0xd   :  { %989 = vmatpush3.bf16.msra.mxu1 %v988_v17  ;;  %v1009_v38 = vpack.c.bf16 %v216_v37, %v215_v35  ;;  %v1012_v41 = vpack.c.bf16 %v218_v40, %v217_v39  ;;  %v743_v42 = vld [vmem:[%s1442_s9] ss:$0 sm:$0xff]  ;;  %v219_v47 = vld [vmem:[%s1436_s3 + $0x30] sm:$0xff]  ;;  %v220_v48 = vld [vmem:[%s1436_s3 + $0x38] sm:$0xff] }
   0xe   :  { %990 = vmatprep.subr.bf16.mxu1 %v1096_v3  ;;  %1007 = vmatpush3.bf16.msra.mxu0 %v1006_v36  ;;  %v1015_v49 = vpack.c.bf16 %v220_v48, %v219_v47  ;;  %v745_v50 = vld [vmem:[%s1442_s9 + $0x1] ss:$0 sm:$0xff]  ;;  %v302_v52 = vld [vmem:[%s1437_s4 + $0x8] sm:$0xff]  ;;  %v303_v58 = vld [vmem:[%s1437_s4 + $0x10] sm:$0xff] }
   0xf   :  { %1008 = vmatprep.subr.bf16.mxu0 %v1096_v3  ;;  %v301_v51 = vld [vmem:[%s1437_s4] sm:$0xff]  ;;  %v304_v59 = vld [vmem:[%s1437_s4 + $0x18] sm:$0xff]  ;;  %v385_v4 = vld [vmem:[%s1438_s5 + $0x8] sm:$0xff] }
  0x10   :  { %v1018_v56 = vpack.c.bf16 %v302_v52, %v301_v51  ;;  %v1021_v60 = vpack.c.bf16 %v304_v59, %v303_v58  ;;  %v746_v61 = vld [vmem:[%s1442_s9 + $0x2] ss:$0 sm:$0xff]  ;;  %v748_v7 = vld [vmem:[%s1442_s9 + $0x3] ss:$0 sm:$0xff]  ;;  %v467_v9 = vld [vmem:[%s1439_s6 + $0x8] sm:$0xff] }
  0x11   :  { %992 = vmatpush3.bf16.msra.mxu1 %v991_v20  ;;  %v384_v2 = vld [vmem:[%s1438_s5] sm:$0xff]  ;;  %v468_v15 = vld [vmem:[%s1439_s6 + $0x10] sm:$0xff]  ;;  %v469_v16 = vld [vmem:[%s1439_s6 + $0x18] sm:$0xff] }
  0x12   :  { %993 = vmatprep.subr.bf16.mxu1 %v1096_v3  ;;  %1010 = vmatpush3.bf16.msra.mxu0 %v1009_v38  ;;  %v1024_v5 = vpack.c.bf16 %v385_v4, %v384_v2  ;;  %v466_v8 = vld [vmem:[%s1439_s6] sm:$0xff]  ;;  %v1030_v17 = vpack.c.bf16 %v469_v16, %v468_v15  ;;  %v550_v20 = vld [vmem:[%s1440_s7 + $0x8] sm:$0xff]  ;;  %v552_v27 = vld [vmem:[%s1440_s7 + $0x18] sm:$0xff] }
  0x13   :  { %1011 = vmatprep.subr.bf16.mxu0 %v1096_v3  ;;  %v1027_v13 = vpack.c.bf16 %v467_v9, %v466_v8  ;;  %v750_v18 = vld [vmem:[%s1442_s9 + $0x4] ss:$0 sm:$0xff]  ;;  %v554_v30 = vld [vmem:[%s1440_s7 + $0x28] sm:$0xff]  ;;  %v638_v36 = vld [vmem:[%s1441_s8 + $0x10] sm:$0xff] }
  0x14   :  { %v549_v19 = vld [vmem:[%s1440_s7] sm:$0xff]  ;;  %v637_v35 = vld [vmem:[%s1441_s8 + $0x8] sm:$0xff]  ;;  %v639_v38 = vld [vmem:[%s1441_s8 + $0x18] sm:$0xff] }
  0x15   :  { %995 = vmatpush3.bf16.msra.mxu1 %v994_v23  ;;  %v1033_v24 = vpack.c.bf16 %v550_v20, %v549_v19  ;;  %v636_v34 = vld [vmem:[%s1441_s8] sm:$0xff]  ;;  %v1048_v39 = vpack.c.bf16 %v639_v38, %v638_v36  ;;  %v645_v47 = vld [vmem:[%s1441_s8 + $0x48] sm:$0xff] }
  0x16   :  { %996 = vmatprep.subr.bf16.mxu1 %v1096_v3  ;;  %1013 = vmatpush3.bf16.msra.mxu0 %v1012_v41  ;;  %v1045_v37 = vpack.c.bf16 %v637_v35, %v636_v34  ;;  %v640_v40 = vld [vmem:[%s1441_s8 + $0x20] sm:$0xff]  ;;  %v641_v41 = vld [vmem:[%s1441_s8 + $0x28] sm:$0xff] }
  0x17   :  { %1014 = vmatprep.subr.bf16.mxu0 %v1096_v3  ;;  %v648_v52 = vld [vmem:[%s1441_s8 + $0x60] sm:$0xff] }
  0x18   :  { %v756_v4 = vld [vmem:[%s1442_s9 + $0x7] ss:$0 sm:$0xff] }
  0x19   :  { %998 = vmatpush3.bf16.msra.mxu1 %v997_v26  ;;  %v551_v26 = vld [vmem:[%s1440_s7 + $0x10] sm:$0xff] }
  0x1a   :  { %999 = vmatprep.subr.bf16.mxu1 %v1096_v3  ;;  %1016 = vmatpush3.bf16.msra.mxu0 %v1015_v49  ;;  %v1036_v28 = vpack.c.bf16 %v552_v27, %v551_v26  ;;  %v646_v49 = vld [vmem:[%s1441_s8 + $0x50] sm:$0xff] }
  0x1b   :  { %1017 = vmatprep.subr.bf16.mxu0 %v1096_v3 }
  0x1d   :  { %1001 = vmatpush3.bf16.msra.mxu1 %v1000_v29  ;;  %v553_v29 = vld [vmem:[%s1440_s7 + $0x20] sm:$0xff] }
  0x1e   :  { %1002 = vmatprep.subr.bf16.mxu1 %v1096_v3  ;;  %v1039_v31 = vpack.c.bf16 %v554_v30, %v553_v29 }
  0x21   :  { %1004 = vmatpush3.bf16.msra.mxu1 %v1003_v32  ;;  %v556_v32 = vld [vmem:[%s1440_s7 + $0x38] sm:$0xff] }
  0x22   :  { %1044 = vmatprep.subr.bf16.mxu1 %v1096_v3 }
  0xde   :  { %v116_v43 = vpop.f32.mrb[0].mxu0 }
  0xdf   :  { %v117_v44 = vadd.f32 %v743_v42, %v116_v43  ;;  %v837_v45 = vpop.f32.mrb[1].mxu0  ;;  %v1051_v42 = vpack.c.bf16 %v641_v41, %v640_v40  ;;  %v642_v43 = vld [vmem:[%s1441_s8 + $0x30] sm:$0xff] }
  0xe1   :  { %v120_v46 = vmax.f32 %v117_v44, 0.0  ;;  %v643_v44 = vld [vmem:[%s1441_s8 + $0x38] sm:$0xff] }
  0xe2   :  { %v1054_v45 = vpack.c.bf16 %v643_v44, %v642_v43 }
  0xe3   :  { %871 = vmatmul.mubr.f32.vlgmr.msra.gmra.mrb[0].mxu1 %v120_v46  ;;  %v644_v46 = vld [vmem:[%s1441_s8 + $0x40] sm:$0xff] }
  0xe4   :  { %972 = vmatprep.mubr.msk.f32.mxu1 %vm1097_vm0, %v1098_v6  ;;  %1046 = vmatpush3.bf16.msra.mxu1 %v1045_v37  ;;  %v1057_v48 = vpack.c.bf16 %v645_v47, %v644_v46 }
  0xe5   :  { %1047 = vmatprep.subr.bf16.mxu1 %v1096_v3 }
  0xe8   :  { %1049 = vmatpush3.bf16.msra.mxu1 %v1048_v39 }
  0xe9   :  { %1050 = vmatprep.subr.bf16.mxu1 %v1096_v3 }
  0xec   :  { %1052 = vmatpush3.bf16.msra.mxu1 %v1051_v42 }
  0xed   :  { %1053 = vmatprep.subr.bf16.mxu1 %v1096_v3 }
  0xf0   :  { %1055 = vmatpush3.bf16.msra.mxu1 %v1054_v45 }
  0xf1   :  { %1056 = vmatprep.subr.bf16.mxu1 %v1096_v3 }
  0xf4   :  { %1058 = vmatpush3.bf16.msra.mxu1 %v1057_v48 }
  0xf5   :  { %1059 = vmatprep.subr.bf16.mxu1 %v1096_v3 }
 0x1b6   :  { %v208_v53 = vpop.f32.mrb[0].mxu1 }
 0x1b7   :  { %v209_v54 = vadd.f32 %v745_v50, %v208_v53  ;;  %v872_v55 = vpop.f32.mrb[1].mxu1  ;;  %v647_v50 = vld [vmem:[%s1441_s8 + $0x58] sm:$0xff]  ;;  %v649_v53 = vld [vmem:[%s1441_s8 + $0x68] sm:$0xff] }
 0x1b8   :  { %v1060_v51 = vpack.c.bf16 %v647_v50, %v646_v49  ;;  %v752_v55 = vld [vmem:[%s1442_s9 + $0x5] ss:$0 sm:$0xff] }
 0x1b9   :  { %v212_v57 = vmax.f32 %v209_v54, 0.0  ;;  %v1063_v54 = vpack.c.bf16 %v649_v53, %v648_v52 }
 0x1ba   :  { %1061 = vmatpush3.bf16.msra.mxu1 %v1060_v51 }
 0x1bb   :  { %890 = vmatmul.mubr.msk.f32.vlgmr.msra.gmra.mrb[2].mxu0 %vm226_vm2, %v212_v57  ;;  %1062 = vmatprep.subr.bf16.mxu1 %v1096_v3 }
 0x1bc   :  { %1019 = vmatpush3.bf16.msra.mxu0 %v1018_v56  ;;  %900 = vmatprep.mubr.msk.f32.mxu0 %vm1097_vm0, %v1098_v6 }
 0x1bd   :  { %1020 = vmatprep.subr.bf16.mxu0 %v1096_v3 }
 0x1be   :  { %1064 = vmatpush3.bf16.msra.mxu1 %v1063_v54 }
 0x1bf   :  { %1065 = vmatprep.subr.bf16.mxu1 %v1096_v3 }
 0x1c0   :  { %1022 = vmatpush3.bf16.msra.mxu0 %v1021_v60  ;;  %v650_v60 = vld [vmem:[%s1441_s8 + $0x70] sm:$0xff] }
 0x1c1   :  { %1023 = vmatprep.subr.bf16.mxu0 %v1096_v3 }
 0x28e   :  { %v296_v62 = vpop.f32.mrb[2].mxu0 }
 0x28f   :  { %v297_v63 = vadd.f32 %v746_v61, %v296_v62  ;;  %v891_v0 = vpop.f32.mrb[3].mxu0  ;;  %v651_v61 = vld [vmem:[%s1441_s8 + $0x78] sm:$0xff]  ;;  %s1072_s8 = scalar_lea.vmem %s736_s28, 128 }
 0x290   :  { %v1066_v62 = vpack.c.bf16 %v651_v61, %v650_v60  ;;  %p1073_p0 = scmp.ne.s32.totalorder %s736_s28, %s1072_s8  ;;  %p1078_p2 = scmp.lt.s32.totalorder %s1072_s8, %s1072_s8 }
 0x291   :  { %v300_v1 = vmax.f32 %v297_v63, 0.0 }
 0x292   :  { %1067 = vmatpush3.bf16.msra.mxu1 %v1066_v62  ;;  %p1079_p3 = por %p1078_p2, %p1077_p1 }
 0x293   :  { %901 = vmatmul.mubr.msk.f32.vlgmr.msra.gmra.mrb[4].mxu0 %vm46_vm1, %v300_v1 }
 0x294   :  { %907 = vmatprep.mubr.msk.f32.mxu0 %vm1097_vm0, %v1098_v6  ;;  %1025 = vmatpush3.bf16.msra.mxu0 %v1024_v5  ;;  %p1080_p4 = pnand %p1079_p3, %p1073_p0 }
 0x295   :  { %1026 = vmatprep.subr.bf16.mxu0 %v1096_v3 }
 0x366   :  { %v379_v10 = vpop.f32.mrb[4].mxu0 }
 0x367   :  { %v380_v11 = vadd.f32 %v748_v7, %v379_v10  ;;  %v902_v12 = vpop.f32.mrb[5].mxu0 }
 0x369   :  { %v383_v14 = vmax.f32 %v380_v11, 0.0 }
 0x36b   :  { %908 = vmatmul.mubr.msk.f32.vlgmr.msra.gmra.mrb[6].mxu0 %vm391_vm3, %v383_v14 }
 0x36c   :  { %1028 = vmatpush3.bf16.msra.mxu0 %v1027_v13  ;;  %918 = vmatprep.mubr.msk.f32.mxu0 %vm1097_vm0, %v1098_v6 }
 0x36d   :  { %1029 = vmatprep.subr.bf16.mxu0 %v1096_v3 }
 0x370   :  { %1031 = vmatpush3.bf16.msra.mxu0 %v1030_v17 }
 0x371   :  { %1032 = vmatprep.subr.bf16.mxu0 %v1096_v3 }
 0x43e   :  { %v461_v21 = vpop.f32.mrb[6].mxu0 }
 0x43f   :  { %v462_v22 = vadd.f32 %v750_v18, %v461_v21  ;;  %v909_v23 = vpop.f32.mrb[7].mxu0 }
 0x441   :  { %v465_v25 = vmax.f32 %v462_v22, 0.0 }
 0x443   :  { %919 = vmatmul.mubr.msk.f32.vlgmr.msra.gmra.mrb[8].mxu0 %vm46_vm1, %v465_v25 }
 0x444   :  { %1034 = vmatpush3.bf16.msra.mxu0 %v1033_v24  ;;  %937 = vmatprep.mubr.msk.f32.mxu0 %vm1097_vm0, %v1098_v6  ;;  %v555_v6 = vld [vmem:[%s1440_s7 + $0x30] sm:$0xff] }
 0x445   :  { %1035 = vmatprep.subr.bf16.mxu0 %v1096_v3  ;;  %v1042_v33 = vpack.c.bf16 %v556_v32, %v555_v6 }
 0x448   :  { %1037 = vmatpush3.bf16.msra.mxu0 %v1036_v28 }
 0x449   :  { %1038 = vmatprep.subr.bf16.mxu0 %v1096_v3 }
 0x44c   :  { %1040 = vmatpush3.bf16.msra.mxu0 %v1039_v31 }
 0x44d   :  { %1041 = vmatprep.subr.bf16.mxu0 %v1096_v3  ;;  %v754_v3 = vld [vmem:[%s1442_s9 + $0x6] ss:$0 sm:$0xff] }
 0x450   :  { %1043 = vmatpush3.bf16.msra.mxu0 %v1042_v33 }
 0x516   :  { %v544_v56 = vpop.f32.mrb[8].mxu0 }
 0x517   :  { %v545_v57 = vadd.f32 %v752_v55, %v544_v56  ;;  %v920_v58 = vpop.f32.mrb[9].mxu0 }
 0x519   :  { %v548_v59 = vmax.f32 %v545_v57, 0.0 }
 0x51b   :  { %938 = vmatmul.mubr.msk.f32.vlgmr.msra.gmra.mrb[10].mxu0 %vm226_vm2, %v548_v59 }
 0x5ee   :  { %v631_v63 = vpop.f32.mrb[10].mxu0 }
 0x5ef   :  { %v632_v0 = vadd.f32 %v754_v3, %v631_v63  ;;  %v939_v1 = vpop.f32.mrb[11].mxu0 }
 0x5f1   :  { %v635_v2 = vmax.f32 %v632_v0, 0.0 }
 0x5f3   :  { %973 = vmatmul.mubr.f32.vlgmr.msra.gmra.mrb[2].mxu1 %v635_v2 }
 0x6c6   :  { %v723_v5 = vpop.f32.mrb[2].mxu1 }
 0x6c7   :  { %v724_v7 = vadd.f32 %v756_v4, %v723_v5  ;;  %v974_v8 = vpop.f32.mrb[3].mxu1 }
 0x6c9   :  { %v727_v9 = vmax.f32 %v724_v7, 0.0 }
 0x6cb   :  { %728 = vst.msk [vmem:[#allocation2] sm:$0xff] %vm46_vm1, %v727_v9 }
 0x6cc   :  { %1083 = shalt.err (!%p1080_p4)
}
 0x6cd   :  { %s1084_s9 = scalar_lea.hbm %s1443_s10, 128 }
 0x6ce   :  { %p1085_p5 = scmp.ne.s32.totalorder %s1443_s10, %s1084_s9  ;;  %p1088_p6 = scmp.lt.u32.totalorder %s1084_s9, %s1443_s10 }
 0x6d0   :  { %p1090_p7 = pnand %p1088_p6, %p1085_p5 }
 0x6d2   :  { %1093 = shalt.err (!%p1090_p7)
}
 0x6d3   :  { %738 = dma.vmem_to_hbm [thread:$0]  %s736_s28, 128, %s1443_s10, [#allocation3]  }
 0x6d4   :  { %1094 = dma.done.wait [#allocation3], 128  }
 0x6d5   :  { %1095 = vsyncadd [#allocation3], 4294967168 }
 0x6d6   :  { %742 = vsyncpa [#allocation3], 1 }

</bundles_post_ra>
